<compile_context>
chip_gen: v6e
topology: v6e:2x2x1
jax: 0.10.0
libtpu: 0.0.40
codegen_flags: <defaults>
</compile_context>

<pallas_src>
import functools

import jax
import jax.numpy as jnp
from jax.experimental import pallas as pl
from jax.experimental.pallas import tpu as pltpu


def _round_up(x, m):
    return ((x + m - 1) // m) * m


def _vmem_budget_and_limit():
    """Generation-aware VMEM sizing (v5e/v6e: 128 MiB physical, v7x: 64 MiB)."""
    phys = 64 * 1024 * 1024  # conservative (v7x-sized) default
    try:
        phys = int(pltpu.get_tpu_info().vmem_capacity_bytes)
    except Exception:
        pass
    if phys >= 128 * 1024 * 1024:
        return 48 * 1024 * 1024, 96 * 1024 * 1024  # (chooser budget, scoped limit)
    return 24 * 1024 * 1024, 40 * 1024 * 1024


def _footprint(tm, tk, tn):
    # double-buffered bf16 x/w tiles + f32 bias/out tiles, plus one f32 accumulator
    return 2 * (tm * tk * 2 + tk * tn * 2 + tn * 4 + tm * tn * 4) + tm * tn * 4


def _choose_tiles(B, D, Lp, budget):
    """Pick (tm, tk, tn): maximize weight residency / lane-dense tiles under budget."""
    tm = min(512, _round_up(B, 8))
    while True:
        # (a) Best case: full contraction dim and full (padded) label dim resident.
        if _footprint(tm, D, Lp) <= budget:
            return tm, D, Lp
        # (b) Full-D blocks, largest 128-aligned tn that fits (direct solve).
        num = budget - 4 * tm * D
        if num > 0:
            tn = min(Lp, (num // (4 * D + 8 + 12 * tm)) // 128 * 128)
            if tn >= 128:
                return tm, D, tn
        # (c) K-tiling fallback for large D: keep tn wide, tile the contraction axis.
        if D % 128 == 0:
            tn = min(Lp, 512)
            num = budget - 8 * tn - 12 * tm * tn
            if num > 0:
                tk = min(D, (num // (4 * tm + 4 * tn)) // 128 * 128)
                while tk >= 128 and D % tk != 0:  # keep K tiles exact (no OOB garbage)
                    tk -= 128
                if tk >= 128:
                    return tm, tk, tn
        # (d) Shrink the row tile and retry.
        if tm <= 8:
            return 8, D, 128  # pathological shapes; let the compiler cope
        tm = max(8, (tm // 2) // 8 * 8)


def _heads_kernel(x_ref, w_ref, b_ref, o_ref, acc_ref):
    # x_ref: (1, tm, tk) bf16   w_ref: (1, tk, tn) bf16
    # b_ref: (1, 1, tn) f32     o_ref: (1, tm, tn) f32   acc_ref: (tm, tn) f32
    k = pl.program_id(3)

    @pl.when(k == 0)
    def _init():
        acc_ref[...] = jnp.zeros_like(acc_ref)

    acc_ref[...] += jnp.dot(x_ref[0], w_ref[0],
                            preferred_element_type=jnp.float32)

    @pl.when(k == pl.num_programs(3) - 1)
    def _finalize():
        o_ref[0] = (acc_ref[...] + b_ref[0]).astype(o_ref.dtype)


@functools.partial(
    jax.jit, static_argnames=("tm", "tk", "tn", "num_labels", "vmem_limit"))
def fused_linear_heads(x, w_t, b, *, tm, tk, tn, num_labels, vmem_limit):
    """y[h] = x[h] @ w_t[h] + b[h] for all heads in one Pallas launch.

    x:   [H, B, D]   bfloat16
    w_t: [H, D, Lp]  bfloat16  (transposed, label dim padded to 128 multiple)
    b:   [H, 1, Lp]  float32
    returns [H, B, num_labels] float32
    """
    H, B, D = x.shape
    _, _, Lp = w_t.shape

    # Grid: heads, label tiles, batch tiles, contraction tiles (reduction last).
    grid = (H, pl.cdiv(Lp, tn), pl.cdiv(B, tm), pl.cdiv(D, tk))

    out = pl.pallas_call(
        _heads_kernel,
        out_shape=jax.ShapeDtypeStruct((H, B, Lp), jnp.float32),
        grid_spec=pltpu.PrefetchScalarGridSpec(
            num_scalar_prefetch=0,
            grid=grid,
            in_specs=[
                pl.BlockSpec((1, tm, tk), lambda h, j, i, k: (h, i, k)),  # activations
                pl.BlockSpec((1, tk, tn), lambda h, j, i, k: (h, k, j)),  # weights
                pl.BlockSpec((1, 1, tn), lambda h, j, i, k: (h, 0, j)),   # bias
            ],
            out_specs=pl.BlockSpec((1, tm, tn), lambda h, j, i, k: (h, i, j)),
            scratch_shapes=[pltpu.VMEM((tm, tn), jnp.float32)],
        ),
        compiler_params=pltpu.CompilerParams(
            dimension_semantics=("parallel", "parallel", "parallel", "arbitrary"),
            vmem_limit_bytes=vmem_limit,
        ),
    )(x, w_t, b)

    if Lp != num_labels:
        # TODO(synk): fuse this slice into the consumer to avoid an extra HBM
        # pass when num_labels is not a multiple of 128.
        out = out[:, :, :num_labels]
    return out


class LinearClassifierPallas:
    """JAX/Pallas equivalent of the PyTorch LinearClassifier module."""

    def __init__(self, num_layers, dim, num_labels=1000, *, key=None):
        self.num_labels = num_labels
        self.num_classifier = num_layers
        self.dim = dim
        if key is None:
            key = jax.random.PRNGKey(0)

        self.weights = []  # PyTorch layout [num_labels, dim], f32 (reference copy)
        self.biases = []   # [num_labels]
        for _ in range(num_layers):
            key, wk = jax.random.split(key)
            w = 0.01 * jax.random.normal(wk, (num_labels, dim), dtype=jnp.float32)
            b = jnp.zeros((num_labels,), dtype=jnp.float32)
            self.weights.append(w)
            self.biases.append(b)

        # Precompute transposed, stacked, lane-padded, bf16 weights ONCE.
        self.Lp = _round_up(num_labels, 128)
        pad = self.Lp - num_labels
        w_t_list = [jnp.pad(w.T, ((0, 0), (0, pad))).astype(jnp.bfloat16)
                    for w in self.weights]                                  # [D, Lp]
        b_list = [jnp.pad(b, (0, pad)).reshape(1, self.Lp) for b in self.biases]
        self.w_t = jnp.stack(w_t_list, axis=0)   # [H, D, Lp] bf16
        self.b_pad = jnp.stack(b_list, axis=0)   # [H, 1, Lp] f32

    def __call__(self, x_list):
        # TODO(synk): if the frozen features are reused across steps, pre-stack and
        # pre-cast them once outside this call to save one HBM pass per forward.
        x = jnp.stack([xi.astype(jnp.bfloat16) for xi in x_list], axis=0)  # [H, B, D]
        _, B, D = x.shape
        budget, limit = _vmem_budget_and_limit()
        tm, tk, tn = _choose_tiles(B, D, self.Lp, budget)
        out = fused_linear_heads(
            x, self.w_t, self.b_pad,
            tm=tm, tk=tk, tn=tn, num_labels=self.num_labels, vmem_limit=limit)
        return [out[i] for i in range(self.num_classifier)]


if __name__ == "__main__":
    # Small, TPU-friendly shapes consistent with the module's forward:
    # num_layers heads, each consuming a [B, dim] feature tensor.
    # num_labels=200 deliberately exercises the pad-to-128-multiple path.
    num_layers = 2
    batch = 8
    dim = 128
    num_labels = 200

    root = jax.random.PRNGKey(0)
    k_model, k_data = jax.random.split(root)

    model = LinearClassifierPallas(num_layers, dim, num_labels, key=k_model)

    x_keys = jax.random.split(k_data, num_layers)
    x_list = [jax.random.normal(k, (batch, dim), dtype=jnp.float32) for k in x_keys]

    outs = model(x_list)
    outs = [jax.block_until_ready(o) for o in outs]

    for i, o in enumerate(outs):
        assert o.shape == (batch, num_labels), o.shape
        w32 = model.weights[i]
        # Tight check against the same bf16-rounded operands (f32 accumulation).
        xb = x_list[i].astype(jnp.bfloat16).astype(jnp.float32)
        wb = w32.astype(jnp.bfloat16).astype(jnp.float32)
        ref_bf16 = xb @ wb.T + model.biases[i]
        assert jnp.allclose(o, ref_bf16, atol=2e-3, rtol=2e-3), f"bf16 mismatch head {i}"
        # Loose check against exact f32 nn.Linear math (bf16 storage tolerance).
        ref_f32 = x_list[i] @ w32.T + model.biases[i]
        assert jnp.allclose(o, ref_f32, atol=5e-2, rtol=5e-2), f"f32 mismatch head {i}"

    print("KERNEL_OK")
</pallas_src>

<mosaic_0001>
module attributes {stable_mosaic.version = 11 : i64} {
  func.func @_heads_kernel(%arg0: i32, %arg1: i32, %arg2: i32, %arg3: i32, %arg4: memref<1x8x128xbf16, #tpu.memory_space<vmem>>, %arg5: memref<1x128x256xbf16, #tpu.memory_space<vmem>>, %arg6: memref<1x1x256xf32, #tpu.memory_space<vmem>>, %arg7: memref<1x8x256xf32, #tpu.memory_space<vmem>>, %arg8: memref<8x256xf32, #tpu.memory_space<vmem>>) attributes {dimension_semantics = [#tpu.dimension_semantics<parallel>, #tpu.dimension_semantics<parallel>, #tpu.dimension_semantics<parallel>, #tpu.dimension_semantics<arbitrary>], iteration_bounds = array<i64: 2, 1, 1, 1>, scalar_prefetch = 0 : i64, scratch_operands = 1 : i64, tpu.core_type = #tpu.core_type<tc>, window_params = [{transform_indices = @transform_0, window_bounds = array<i64: 1, 8, 128>}, {transform_indices = @transform_1, window_bounds = array<i64: 1, 128, 256>}, {transform_indices = @transform_2, window_bounds = array<i64: 1, 1, 256>}, {transform_indices = @transform_3, window_bounds = array<i64: 1, 8, 256>}]} {
    %c0_i32 = arith.constant 0 : i32
    %0 = arith.cmpi eq, %arg3, %c0_i32 : i32
    %1 = arith.extui %0 : i1 to i32
    %c0_i32_0 = arith.constant 0 : i32
    %2 = arith.cmpi ne, %1, %c0_i32_0 : i32
    scf.if %2 {
      %cst_12 = arith.constant 0.000000e+00 : f32
      %14 = vector.broadcast %cst_12 : f32 to vector<8x256xf32>
      %c0_13 = arith.constant 0 : index
      %c0_14 = arith.constant 0 : index
      %15 = vector.load %arg8[%c0_13, %c0_14] : memref<8x256xf32, #tpu.memory_space<vmem>>, vector<8x256xf32>
      tpu.vector_store %arg8[%c0_13, %c0_14], %14 {strides = array<i32>} : memref<8x256xf32, #tpu.memory_space<vmem>>, vector<8x256xf32>,
    } else {
    }
    %c0 = arith.constant 0 : index
    %c0_1 = arith.constant 0 : index
    %3 = vector.load %arg8[%c0, %c0_1] : memref<8x256xf32, #tpu.memory_space<vmem>>, vector<8x256xf32>
    %c0_2 = arith.constant 0 : index
    %c0_3 = arith.constant 0 : index
    %c0_4 = arith.constant 0 : index
    %4 = vector.load %arg4[%c0_2, %c0_3, %c0_4] : memref<1x8x128xbf16, #tpu.memory_space<vmem>>, vector<1x8x128xbf16>
    %5 = vector.shape_cast %4 : vector<1x8x128xbf16> to vector<8x128xbf16>
    %c0_5 = arith.constant 0 : index
    %c0_6 = arith.constant 0 : index
    %c0_7 = arith.constant 0 : index
    %6 = vector.load %arg5[%c0_5, %c0_6, %c0_7] : memref<1x128x256xbf16, #tpu.memory_space<vmem>>, vector<1x128x256xbf16>
    %7 = vector.shape_cast %6 : vector<1x128x256xbf16> to vector<128x256xbf16>
    %cst = arith.constant dense<0.000000e+00> : vector<8x256xf32>
    %8 = tpu.matmul %5, %7, %cst {dimension_numbers = #tpu.dot_dimension_numbers<[1], [0], [0], [1], [0, 0, 1, 1], [], []>} : vector<8x128xbf16>, vector<128x256xbf16>, vector<8x256xf32> -> vector<8x256xf32>
    %9 = arith.addf %3, %8 : vector<8x256xf32>
    %c0_8 = arith.constant 0 : index
    %c0_9 = arith.constant 0 : index
    %10 = vector.load %arg8[%c0_8, %c0_9] : memref<8x256xf32, #tpu.memory_space<vmem>>, vector<8x256xf32>
    tpu.vector_store %arg8[%c0_8, %c0_9], %9 {strides = array<i32>} : memref<8x256xf32, #tpu.memory_space<vmem>>, vector<8x256xf32>,
    %c0_i32_10 = arith.constant 0 : i32
    %11 = arith.cmpi eq, %arg3, %c0_i32_10 : i32
    %12 = arith.extui %11 : i1 to i32
    %c0_i32_11 = arith.constant 0 : i32
    %13 = arith.cmpi ne, %12, %c0_i32_11 : i32
    scf.if %13 {
      %c0_12 = arith.constant 0 : index
      %c0_13 = arith.constant 0 : index
      %14 = vector.load %arg8[%c0_12, %c0_13] : memref<8x256xf32, #tpu.memory_space<vmem>>, vector<8x256xf32>
      %c0_14 = arith.constant 0 : index
      %c0_15 = arith.constant 0 : index
      %c0_16 = arith.constant 0 : index
      %15 = vector.load %arg6[%c0_14, %c0_15, %c0_16] : memref<1x1x256xf32, #tpu.memory_space<vmem>>, vector<1x1x256xf32>
      %16 = vector.shape_cast %15 : vector<1x1x256xf32> to vector<1x256xf32>
      %17 = vector.broadcast %16 : vector<1x256xf32> to vector<8x256xf32>
      %18 = arith.addf %14, %17 : vector<8x256xf32>
      %c0_17 = arith.constant 0 : index
      %c0_18 = arith.constant 0 : index
      %c0_19 = arith.constant 0 : index
      %19 = vector.load %arg7[%c0_17, %c0_18, %c0_19] : memref<1x8x256xf32, #tpu.memory_space<vmem>>, vector<1x8x256xf32>
      %20 = vector.shape_cast %19 : vector<1x8x256xf32> to vector<8x256xf32>
      %21 = vector.shape_cast %18 : vector<8x256xf32> to vector<1x8x256xf32>
      tpu.vector_store %arg7[%c0_17, %c0_18, %c0_19], %21 {strides = array<i32>} : memref<1x8x256xf32, #tpu.memory_space<vmem>>, vector<1x8x256xf32>,
    } else {
    }
    return
  }
  func.func @transform_0(%arg0: i32, %arg1: i32, %arg2: i32, %arg3: i32) -> (i32, i32, i32) {
    %c0_i32 = arith.constant 0 : i32
    return %arg0, %arg2, %arg3 : i32, i32, i32
  }
  func.func @transform_1(%arg0: i32, %arg1: i32, %arg2: i32, %arg3: i32) -> (i32, i32, i32) {
    %c0_i32 = arith.constant 0 : i32
    return %arg0, %arg3, %arg1 : i32, i32, i32
  }
  func.func @transform_2(%arg0: i32, %arg1: i32, %arg2: i32, %arg3: i32) -> (i32, i32, i32) {
    %c0_i32 = arith.constant 0 : i32
    %c0_i32_0 = arith.constant 0 : i32
    return %arg0, %c0_i32, %arg1 : i32, i32, i32
  }
  func.func @transform_3(%arg0: i32, %arg1: i32, %arg2: i32, %arg3: i32) -> (i32, i32, i32) {
    %c0_i32 = arith.constant 0 : i32
    return %arg0, %arg2, %arg1 : i32, i32, i32
  }
}

</mosaic_0001>

<bundles_post_ra>
// kernel: fused_linear_heads.1
= control target key start
LH: loop header
LB: loop body
LE: loop exit
PB: predicated region body
PF: predicated region fallthrough
CT: control target
= control target key end

     0   :  { %s1197_s0 = inlined_call_operand.hbm [shape: bf16[2,8,128], index: 0, kind: input, shape index: {}]   ;;  %s1198_s1 = inlined_call_operand.hbm [shape: bf16[2,128,256], index: 1, kind: input, shape index: {}]   ;;  %s1199_s2 = inlined_call_operand.hbm [shape: f32[2,1,256], index: 2, kind: input, shape index: {}]   ;;  %s1200_s3 = inlined_call_operand.hbm [shape: f32[2,8,256], index: 3, kind: output, shape index: {}]  }
   0x1   :  { %1202 = sst [smem:[#allocation15_spill]] %s1198_s1 }
   0x2   :  { %8 = vsyncpa [#allocation4], 0 }
   0x3   :  { %10 = vsyncpa [#allocation4 + $0x1], 0 }
   0x4   :  { %11 = vsyncpa [#allocation7], 0 }
   0x5   :  { %13 = vsyncpa [#allocation7 + $0x1], 0 }
   0x6   :  { %14 = vsyncpa [#allocation5], 0 }
   0x7   :  { %16 = vsyncpa [#allocation5 + $0x1], 0  ;;  %s984_s12 = smov 0   ;;  %s986_s13 = smov 0  }
   0x8   :  { %s988_s14 = smov 0   ;;  %s990_s15 = smov 0  }
   0x9   :  { %s992_s16 = smov 0   ;;  %s994_s17 = smov 0  }
   0xa LB: > { %s1015_s18 = sadd.s32 4294967295, %s955_s17   ;;  %s648_s19 = sadd.s32 4294967294, %s955_s17   ;;  %s955_s17 = sphi %s994_s17, %s22_s17   ;;  %s951_s16 = sphi %s992_s16, %s1218_s16   ;;  %s947_s15 = sphi %s990_s15, %s1217_s15   ;;  %s943_s14 = sphi %s988_s14, %s1216_s14   ;;  %s939_s13 = sphi %s986_s13, %s1215_s13   ;;  %s935_s12 = sphi %s984_s12, %s1214_s12  }
   0xb   : > { %s48_s20 = sadd.s32 1, %s951_s16  ;;  %s59_s21 = sadd.s32 1, %s943_s14 }
   0xc   : > { %p50_p0 = scmp.ge.s32.totalorder %s48_s20, 2  ;;  %p66_p1 = scmp.ne.s32.totalorder %s943_s14, %s939_s13 }
   0xd   : > { %p67_p2 = scmp.eq.s32.totalorder %s955_s17, 0  ;;  %p72_p3 = scmp.ne.s32.totalorder %s939_s13, %s935_s12 }
   0xe   : > { %s1220_s20 = smov (%p50_p0, %s48_s20), 0  ;;  %p73_p5 = scmp.eq.s32.totalorder %s1015_s18, 0 }
   0xf   : > { %1203 = sst [smem:[#allocation13_spill]] %s1220_s20  ;;  %p1027_p4 = por %p67_p2, %p66_p1 }
  0x10   : > { %s52_s23 = ssub.s32 %s951_s16, %s1220_s20  ;;  %p158_p6 = scmp.eq.s32.totalorder %s1015_s18, 1 }
  0x11   : > { %p57_p7 = scmp.eq.s32.totalorder %s52_s23, 0  ;;  %p1035_p8 = por %p73_p5, %p72_p3 }
  0x12   : > { %p1039_p9 = por %p158_p6, %p66_p1  ;;  %p164_p10 = scmp.eq.s32.totalorder %s648_s19, 1 }
  0x13   : > { %s1044_s26 = scalar_select %p57_p7, %s943_s14, %s59_s21  }
  0x14   : > { %p1046_p11 = por %p164_p10, %p72_p3  ;;  %p650_p12 = scmp.ge.s32.totalorder %s955_s17, 2 }
  0x15   : > { %1207 = sst [smem:[#allocation14_spill]] %s1044_s26  ;;  %p710_p13 = scmp.lt.s32.totalorder %s955_s17, 2 }
  0x16   : > { %s1053_s28 = sand.u32 1, %s943_s14   ;;  %s204_s29 = sand.u32 1, %s955_s17  }
  0x17   : > { %s653_s30 = sshll.u32 %s1053_s28, 7  ;;  %p1059_p0 = pnand %p710_p13, %p1027_p4 }
  0x18   : > { %s685_s5 = sshll.u32 %s951_s16, 11  ;;  %s1210_s1 = sld [smem:[#allocation15_spill]] }
  0x19   : > { %s208_s9 = scalar_lea.vmem [#allocation6], %s653_s30  ;;  %s1067_s11 = scalar_lea.sflag [#allocation7], %s204_s29 }
  0x1a   : > { %s220_s10 = sshll.u32 %s208_s9, 4  ;;  %p789_p1 = pneg %p1059_p0  ;;  %s221_s10 = int_to_ptr.vmem [resolvable:$true] %s220_s10 }
  0x1b   : > { %s800_s19 = scalar_lea.vmem %s221_s10, 2048  ;;  %s957_s21 = smov [#allocation6]  }
  0x1c   : > { %p801_p2 = scmp.ne.s32.totalorder %s221_s10, %s800_s19  ;;  %s805_s22 = sshll.u32 %s957_s21, 4  ;;  %s806_s22 = int_to_ptr.vmem [resolvable:$false] %s805_s22 }
  0x1d   : > { %s807_s23 = scalar_lea.vmem %s806_s22, 4096  ;;  %p808_p5 = scmp.lt.s32.totalorder %s221_s10, %s806_s22 }
  0x1e   : > { %s219_s8 = scalar_lea.hbm %s1210_s1, %s685_s5  ;;  %p803_p3 = pnand %p801_p2, %p789_p1 }
  0x1f   : > { %p809_p6 = scmp.lt.s32.totalorder %s807_s23, %s800_s19 }
  0x20   : > { %p804_p4 = pneg %p803_p3 }
  0x21   : > { %p810_p7 = por %p809_p6, %p808_p5 }
  0x23   : > { %p811_p10 = pnand %p810_p7, %p804_p4 }
  0x25   : > { %814 = shalt.err (!%p811_p10)
}
  0x26   : > { %s958_s30 = smov 128   ;;  %s959_s29 = smov 8  }
  0x27   : > { %702 = dma.hbm_to_vmem [thread:$0]  (!%p1059_p0), %s219_s8, 2048, %s221_s10, %s1067_s11, %s958_s30, %s958_s30, %s959_s29  }
  0x28   : > { %p659_p13 = scmp.ge.s32.totalorder %s955_s17, 1  ;;  %p249_p2 = scmp.lt.s32.totalorder %s955_s17, 3 }
  0x29   : > { %s651_s6 = sshll.u32 %s1053_s28, 2  ;;  %s652_s7 = sshll.u32 %s951_s16, 6 }
  0x2a   : > { %p1079_p3 = pnand %p659_p13, %p249_p2  ;;  %s195_s21 = scalar_lea.hbm %s1197_s0, %s652_s7 }
  0x2b   : > { %s188_s22 = scalar_lea.vmem [#allocation3], %s651_s6  ;;  %s656_s1 = sshll.u32 %s1053_s28, 1 }
  0x2c   : > { %s197_s23 = sshll.u32 %s188_s22, 4  ;;  %s185_s20 = scalar_lea.sflag [#allocation4], %s1053_s28  ;;  %s198_s23 = int_to_ptr.vmem [resolvable:$true] %s197_s23 }
  0x2d   : > { %s828_s26 = scalar_lea.vmem %s198_s23, 64  ;;  %s960_s8 = smov [#allocation3]  }
  0x2e   : > { %p829_p4 = scmp.ne.s32.totalorder %s198_s23, %s828_s26  ;;  %s833_s10 = sshll.u32 %s960_s8, 4  ;;  %s834_s10 = int_to_ptr.vmem [resolvable:$false] %s833_s10 }
  0x2f   : > { %s835_s30 = scalar_lea.vmem %s834_s10, 128  ;;  %p836_p7 = scmp.lt.s32.totalorder %s198_s23, %s834_s10 }
  0x30   : > { %p831_p5 = pnand %p829_p4, %p789_p1  ;;  %p837_p10 = scmp.lt.s32.totalorder %s835_s30, %s828_s26 }
  0x32   : > { %p832_p6 = pneg %p831_p5  ;;  %p838_p13 = por %p837_p10, %p836_p7 }
  0x34   : > { %p839_p2 = pnand %p838_p13, %p832_p6 }
  0x36   : > { %842 = shalt.err (!%p839_p2)
}
  0x37   : > { %699 = dma.hbm_to_vmem [thread:$0]  (!%p1059_p0), %s195_s21, 64, %s198_s23, %s185_s20  }
  0x38   : > { %s686_s28 = sshll.u32 %s951_s16, 5  ;;  %s234_s29 = scalar_lea.vmem [#allocation8], %s656_s1 }
  0x39   : > { %s244_s6 = sshll.u32 %s234_s29, 4  ;;  %s242_s19 = scalar_lea.hbm %s1199_s2, %s686_s28  ;;  %s245_s6 = int_to_ptr.vmem [resolvable:$true] %s244_s6 }
  0x3a   : > { %s856_s22 = scalar_lea.vmem %s245_s6, 32  ;;  %s961_s26 = smov [#allocation8]  }
  0x3b   : > { %p857_p4 = scmp.ne.s32.totalorder %s245_s6, %s856_s22  ;;  %s861_s8 = sshll.u32 %s961_s26, 4  ;;  %s862_s8 = int_to_ptr.vmem [resolvable:$false] %s861_s8 }
  0x3c   : > { %s863_s10 = scalar_lea.vmem %s862_s8, 64  ;;  %p864_p7 = scmp.lt.s32.totalorder %s245_s6, %s862_s8 }
  0x3d   : > { %p859_p5 = pnand %p857_p4, %p789_p1  ;;  %p865_p10 = scmp.lt.s32.totalorder %s863_s10, %s856_s22 }
  0x3f   : > { %p860_p6 = pneg %p859_p5  ;;  %p866_p13 = por %p865_p10, %p864_p7 }
  0x41   : > { %p867_p2 = pnand %p866_p13, %p860_p6 }
  0x43   : > { %870 = shalt.err (!%p867_p2)
}
  0x44   : > { %705 = dma.hbm_to_vmem [thread:$0]  (!%p1059_p0), %s242_s19, 32, %s245_s6, %s1067_s11  }
  0x45   : > { %253 = sbr.rel (%p1079_p3) target bundleno = 322 (0x142), region = 32  ;;  %s1108_s1 = sand.u32 (!%p1079_p3), 1, %s939_s13  }
  0x46   : > { %s660_s20 = sshll.u32 (!%p1079_p3), %s1108_s1, 2  ;;  %s256_s21 = scalar_lea.sflag (!%p1079_p3), [#allocation4], %s1108_s1 }
  0x47   : > { %s1112_s23 = scalar_lea.vmem (!%p1079_p3), [#allocation3], %s660_s20 }
  0x4a   : > { %922 = dma.done.wait (%p1035_p8), %s256_s21, 64  }
  0x4b   : > { %924 = vsyncadd (%p1035_p8), %s256_s21, 4294967232  ;;  %s264_s4 = sand.u32 1, %s1015_s18   ;;  %s661_s11 = sshll.u32 %s1108_s1, 7 }
  0x4c   : > { %s265_s5 = scalar_lea.sflag [#allocation7], %s264_s4  ;;  %s1120_s30 = scalar_lea.vmem [#allocation6], %s661_s11 }
  0x4d   : > { %926 = dma.done.wait (%p1035_p8), %s265_s5, 2080  }
  0x4e   : > { %928 = vsyncadd (%p1035_p8), %s265_s5, 4294965216  ;;  %v962_v0 = vmov 0   ;;  %v763_v1 = vld [vmem:[%s1120_s30 + $0x74] ss:$8 sps:$4 sm:$0xff]   ;;  %v765_v2 = vld [vmem:[%s1120_s30 + $0x70] ss:$8 sps:$4 sm:$0xff]   ;;  %v472_v18 = vlaneseq }
  0x4f   : > { %452 = vmatprep.mubr.bf16.mxu0 %v962_v0  ;;  %420 = vmatprep.subr.bf16.mxu0 %v763_v1  ;;  %v766_v3 = vld [vmem:[%s1120_s30 + $0x64] ss:$8 sps:$4 sm:$0xff]   ;;  %v768_v4 = vld [vmem:[%s1120_s30 + $0x60] ss:$8 sps:$4 sm:$0xff]   ;;  %v769_v5 = vld [vmem:[%s1120_s30 + $0x54] ss:$8 sps:$4 sm:$0xff]  }
  0x50   : > { %421 = vmatpush1.bf16.msra.mxu0 %v765_v2  ;;  %v771_v6 = vld [vmem:[%s1120_s30 + $0x50] ss:$8 sps:$4 sm:$0xff]   ;;  %v772_v7 = vld [vmem:[%s1120_s30 + $0x44] ss:$8 sps:$4 sm:$0xff]   ;;  %v774_v8 = vld [vmem:[%s1120_s30 + $0x40] ss:$8 sps:$4 sm:$0xff]  }
  0x51   : > { %422 = vmatprep.subr.bf16.mxu0 %v766_v3  ;;  %v775_v9 = vld [vmem:[%s1120_s30 + $0x34] ss:$8 sps:$4 sm:$0xff]   ;;  %v777_v10 = vld [vmem:[%s1120_s30 + $0x30] ss:$8 sps:$4 sm:$0xff]   ;;  %v778_v11 = vld [vmem:[%s1120_s30 + $0x24] ss:$8 sps:$4 sm:$0xff]  }
  0x52   : > { %v780_v12 = vld [vmem:[%s1120_s30 + $0x20] ss:$8 sps:$4 sm:$0xff]   ;;  %v781_v13 = vld [vmem:[%s1120_s30 + $0x14] ss:$8 sps:$4 sm:$0xff]   ;;  %v783_v14 = vld [vmem:[%s1120_s30 + $0x10] ss:$8 sps:$4 sm:$0xff]  }
  0x53   : > { %v784_v15 = vld [vmem:[%s1120_s30 + $0x4] ss:$8 sps:$4 sm:$0xff]   ;;  %v786_v16 = vld [vmem:[%s1120_s30] ss:$8 sps:$4 sm:$0xff]   ;;  %v323_v17 = vld [vmem:[%s1112_s23] sm:$0xf] }
  0x54   : > { %423 = vmatpush1.bf16.msra.mxu0 %v768_v4  ;;  %s662_s18 = sshll.u32 %s1108_s1, 1  ;;  %v473_v19 = vshrl.u32 %v472_v18, 7  ;;  %s663_s24 = sshll.u32 %s1108_s1, 4 }
  0x55   : > { %424 = vmatprep.subr.bf16.mxu0 %v769_v5  ;;  %s277_s28 = scalar_lea.vmem [#allocation8], %s662_s18  ;;  %s687_s29 = sshll.u32 %s947_s15, 8 }
  0x56   : > { %v474_v20 = vsub.s32 0, %v473_v19  ;;  %v470_v21 = vld [vmem:[%s277_s28] sm:$0x3]  ;;  %v478_v22 = vsub.s32 1, %v473_v19  ;;  %s309_s6 = scalar_lea.vmem [#allocation9], %s663_s24  ;;  %s1149_s22 = scalar_lea.hbm %s1200_s3, %s687_s29 }
  0x57   : > { %s505_s7 = sshll.u32 %s309_s6, 4  ;;  %s487_s15 = scalar_lea.sflag [#allocation5], %s1108_s1  ;;  %s1151_s7 = int_to_ptr.vmem [resolvable:$true] %s505_s7 }
  0x58   : > { %425 = vmatpush1.bf16.msra.mxu0 %v771_v6  ;;  %v475_v23 = vrot.slane %v470_v21, %v474_v20  ;;  %v479_v24 = vrot.slane %v470_v21, %v478_v22  ;;  %s871_s26 = scalar_lea.vmem %s1151_s7, 256  ;;  %s963_s8 = smov [#allocation9]  }
  0x59   : > { %426 = vmatprep.subr.bf16.mxu0 %v772_v7  ;;  %p872_p8 = scmp.ne.s32.totalorder %s1151_s7, %s871_s26  ;;  %s875_s10 = sshll.u32 %s963_s8, 4  ;;  %s876_s10 = int_to_ptr.vmem [resolvable:$false] %s875_s10 }
  0x5a   : > { %s877_s20 = scalar_lea.vmem %s876_s10, 512  ;;  %p878_p3 = scmp.lt.s32.totalorder %s1151_s7, %s876_s10 }
  0x5b   : > { %p873_p0 = pnand %p872_p8, %p1039_p9  ;;  %p879_p4 = scmp.lt.s32.totalorder %s877_s20, %s871_s26 }
  0x5c   : > { %427 = vmatpush1.bf16.msra.mxu0 %v774_v8 }
  0x5d   : > { %428 = vmatprep.subr.bf16.mxu0 %v775_v9  ;;  %p874_p1 = pneg %p873_p0  ;;  %p880_p5 = por %p879_p4, %p878_p3 }
  0x5f   : > { %p881_p6 = pnand %p880_p5, %p874_p1 }
  0x60   : > { %429 = vmatpush1.bf16.msra.mxu0 %v777_v10 }
  0x61   : > { %430 = vmatprep.subr.bf16.mxu0 %v778_v11 }
  0x64   : > { %431 = vmatpush1.bf16.msra.mxu0 %v780_v12 }
  0x65   : > { %432 = vmatprep.subr.bf16.mxu0 %v781_v13 }
  0x68   : > { %433 = vmatpush1.bf16.msra.mxu0 %v783_v14 }
  0x69   : > { %434 = vmatprep.subr.bf16.mxu0 %v784_v15 }
  0x6c   : > { %435 = vmatpush1.bf16.msra.mxu0 %v786_v16 }
  0x6f   : > { %453 = vmatmul.mubr.bf16.vlgmr.msra.gmra.mxu0 %v323_v17 }
 0x12f   : > { %v454_v25 = vpop.f32.mrf.mxu0 }
 0x130   : > { %v482_v26 = vadd.f32 %v475_v23, %v454_v25 }
 0x131   : > { %v456_v27 = vpop.f32.mrf.mxu0 }
 0x132   : > { %484 = vst [vmem:[%s309_s6] sm:$0xff] %v482_v26  ;;  %v483_v28 = vadd.f32 %v479_v24, %v456_v27 }
 0x133   : > { %v458_v29 = vpop.f32.mrf.mxu0 }
 0x134   : > { %485 = vst [vmem:[%s309_s6 + $0x8] sm:$0xff] %v483_v28 }
 0x135   : > { %v459_v30 = vpop.f32.mrf.mxu0 }
 0x136   : > { %884 = shalt.err (!%p881_p6)
}
 0x137   : > { %s885_s21 = scalar_lea.hbm %s1149_s22, 256  ;;  %s889_s4 = scalar_lea.hbm %s1200_s3, 512 }
 0x138   : > { %p886_p7 = scmp.ne.s32.totalorder %s1149_s22, %s885_s21  ;;  %p890_p2 = scmp.lt.s32.totalorder %s1149_s22, %s1200_s3 }
 0x139   : > { %p891_p8 = scmp.lt.s32.totalorder %s889_s4, %s885_s21 }
 0x13a   : > { %p887_p10 = pnand %p886_p7, %p1039_p9 }
 0x13b   : > { %p892_p0 = por %p891_p8, %p890_p2 }
 0x13c   : > { %p888_p13 = pneg %p887_p10 }
 0x13e   : > { %p893_p1 = pnand %p892_p0, %p888_p13 }
 0x140   : > { %896 = shalt.err (!%p893_p1)
}
 0x141   : > { %694 = dma.vmem_to_hbm [thread:$0]  (%p1039_p9), %s1151_s7, 256, %s1149_s22, %s487_s15  }
 0x142 PF: > { %s517_s30 = sand.u32 1, %s935_s12   ;;  %p707_p3 = pnand %p650_p12, %p1046_p11 }
 0x143   : > { %s518_s18 = scalar_lea.sflag [#allocation5], %s517_s30 }
 0x144   : > { %p708_p4 = pneg %p707_p3 }
 0x146   : > { %930 = dma.done.wait (%p708_p4), %s518_s18, 256  }
 0x147   : > { %932 = vsyncadd (%p708_p4), %s518_s18, 4294967040  ;;  %s22_s17 = sadd.s32 1, %s955_s17   ;;  %s1212_s25 = sld [smem:[#allocation14_spill]] }
 0x148   : > { %p19_p5 = scmp.ge.s32.totalorder %s22_s17, 4   ;;  %s1213_s24 = sld [smem:[#allocation13_spill]] }
 0x149   : > { %s1214_s12 = smov %s939_s13  ;;  %s1215_s13 = smov %s943_s14 }
 0x14a   : > { %s1217_s15 = smov %s951_s16  ;;  %21 = sbr.rel (!%p19_p5) target bundleno = 10 (0xa), region = 109 }
 0x14d   : > { %s1216_s14 = smov %s1212_s25 }
 0x14e   : > { %s1218_s16 = smov %s1213_s24 }
 0x14f   :  { %523 = vsyncpa [#allocation4], 1 }
 0x150   :  { %525 = vsyncpa [#allocation4 + $0x1], 1 }
 0x151   :  { %526 = vsyncpa [#allocation7], 1 }
 0x152   :  { %528 = vsyncpa [#allocation7 + $0x1], 1 }
 0x153   :  { %529 = vsyncpa [#allocation5], 1 }
 0x154   :  { %531 = vsyncpa [#allocation5 + $0x1], 1 }

</bundles_post_ra>
